<compile_context>
chip_gen: v5e
topology: v5e:2x2
jax: 0.10.0
libtpu: 0.0.40
codegen_flags: <defaults>
</compile_context>

<pallas_src>
import functools
import math

import jax
import jax.numpy as jnp
from jax.experimental import pallas as pl
from jax.experimental.pallas import tpu as pltpu


# ----------------------------------------------------------------------------
# Kernels
# ----------------------------------------------------------------------------
def _conv_stats_kernel(w_ref, p_ref, y_ref, sum_ref, ssq_ref):
    """y = W @ P (bf16 MXU, f32 acc); accumulate per-channel sum / sumsq.

    No bias here: a conv bias added before training-mode BatchNorm cancels
    exactly, and leaving it out keeps the zero-padded M columns at exactly 0
    so the statistics need no edge masking.
    """
    @pl.when(pl.program_id(0) == 0)
    def _():
        sum_ref[...] = jnp.zeros_like(sum_ref)
        ssq_ref[...] = jnp.zeros_like(ssq_ref)

    acc = jnp.dot(w_ref[...], p_ref[...], preferred_element_type=jnp.float32)
    sum_ref[...] += jnp.sum(acc, axis=1, keepdims=True)
    ssq_ref[...] += jnp.sum(acc * acc, axis=1, keepdims=True)
    y_ref[...] = acc.astype(y_ref.dtype)


def _conv_bias_lrelu_kernel(w_ref, b_ref, p_ref, y_ref, *, slope):
    """norm=False path: conv + bias + LeakyReLU in one shot."""
    acc = jnp.dot(w_ref[...], p_ref[...], preferred_element_type=jnp.float32)
    acc = acc + b_ref[...]
    y_ref[...] = jnp.where(acc >= 0.0, acc, slope * acc)


def _bn_lrelu_kernel(y_ref, sum_ref, ssq_ref, g_ref, beta_ref, o_ref,
                     *, inv_m, eps, slope):
    mean = sum_ref[...] * inv_m                                   # (Cout_p, 1)
    var = jnp.maximum(ssq_ref[...] * inv_m - mean * mean, 0.0)    # biased (training BN)
    scale = jax.lax.rsqrt(var + eps) * g_ref[...]
    shift = beta_ref[...] - mean * scale
    y = y_ref[...].astype(jnp.float32) * scale + shift
    o_ref[...] = jnp.where(y >= 0.0, y, slope * y)


# ----------------------------------------------------------------------------
# Wrapper
# ----------------------------------------------------------------------------
def _ceil_to(x, m):
    return ((x + m - 1) // m) * m


def downsample(x, w, b, gamma=None, beta=None, *, stride=2, padding=1,
               norm=True, eps=1e-5, slope=0.2, tm=1024):
    """Pallas TPU equivalent of Downsample.forward (training-mode BatchNorm)."""
    N, Cin, H, W = x.shape
    Cout, _, kh, kw = w.shape
    Ho = (H + 2 * padding - kh) // stride + 1
    Wo = (W + 2 * padding - kw) // stride + 1
    M = N * Ho * Wo
    K = Cin * kh * kw

    # ---- host-side layout plumbing (channel-first, stride-2 decimated taps) ----
    xc = jnp.pad(x.transpose(1, 0, 2, 3),
                 ((0, 0), (0, 0), (padding, padding), (padding, padding)))
    taps = [xc[:, :, i:i + stride * Ho:stride, j:j + stride * Wo:stride]
            for i in range(kh) for j in range(kw)]                # each (Cin,N,Ho,Wo)
    P = jnp.stack(taps, axis=1).reshape(K, M)                     # (Cin*kh*kw, N*Ho*Wo)

    Cout_p = _ceil_to(Cout, 16)                                   # bf16 sublane packing
    K_p = _ceil_to(K, 16)
    tm = max(128, _ceil_to(min(tm, _ceil_to(M, 128)), 128))
    M_p = _ceil_to(M, tm)
    n_m = M_p // tm

    P = jnp.pad(P, ((0, K_p - K), (0, M_p - M))).astype(jnp.bfloat16)
    w_mat = jnp.pad(w.reshape(Cout, K),
                    ((0, Cout_p - Cout), (0, K_p - K))).astype(jnp.bfloat16)

    w_spec = pl.BlockSpec((Cout_p, K_p), lambda m: (0, 0))
    vec_spec = pl.BlockSpec((Cout_p, 1), lambda m: (0, 0))
    p_spec = pl.BlockSpec((K_p, tm), lambda m: (0, m))
    y_spec = pl.BlockSpec((Cout_p, tm), lambda m: (0, m))

    if norm:
        if gamma is None:
            gamma = jnp.ones((Cout,), jnp.float32)
        if beta is None:
            beta = jnp.zeros((Cout,), jnp.float32)

        # Pass 1: conv (bias-free; it cancels in BN) + running per-channel stats.
        y, s, ss = pl.pallas_call(
            _conv_stats_kernel,
            out_shape=(jax.ShapeDtypeStruct((Cout_p, M_p), jnp.bfloat16),
                       jax.ShapeDtypeStruct((Cout_p, 1), jnp.float32),
                       jax.ShapeDtypeStruct((Cout_p, 1), jnp.float32)),
            grid=(n_m,),
            in_specs=[w_spec, p_spec],
            out_specs=(y_spec, vec_spec, vec_spec),
            compiler_params=pltpu.CompilerParams(
                dimension_semantics=("arbitrary",)),   # stats accumulate across M
        )(w_mat, P)

        g_col = jnp.pad(gamma, (0, Cout_p - Cout)).reshape(Cout_p, 1).astype(jnp.float32)
        beta_col = jnp.pad(beta, (0, Cout_p - Cout)).reshape(Cout_p, 1).astype(jnp.float32)

        # Pass 2: BN affine + LeakyReLU (mem-bound; bf16 intermediate read).
        out = pl.pallas_call(
            functools.partial(_bn_lrelu_kernel, inv_m=1.0 / M, eps=eps, slope=slope),
            out_shape=jax.ShapeDtypeStruct((Cout_p, M_p), jnp.float32),
            grid=(n_m,),
            in_specs=[y_spec, vec_spec, vec_spec, vec_spec, vec_spec],
            out_specs=pl.BlockSpec((Cout_p, tm), lambda m: (0, m)),
            compiler_params=pltpu.CompilerParams(
                dimension_semantics=("parallel",)),
        )(y, s, ss, g_col, beta_col)
    else:
        b_col = jnp.pad(b, (0, Cout_p - Cout)).reshape(Cout_p, 1).astype(jnp.float32)
        out = pl.pallas_call(
            functools.partial(_conv_bias_lrelu_kernel, slope=slope),
            out_shape=jax.ShapeDtypeStruct((Cout_p, M_p), jnp.float32),
            grid=(n_m,),
            in_specs=[w_spec, vec_spec, p_spec],
            out_specs=pl.BlockSpec((Cout_p, tm), lambda m: (0, m)),
            compiler_params=pltpu.CompilerParams(
                dimension_semantics=("parallel",)),
        )(w_mat, b_col, P)

    return out[:Cout, :M].reshape(Cout, N, Ho, Wo).transpose(1, 0, 2, 3)


# ----------------------------------------------------------------------------
# Pure-JAX reference (for correctness check only)
# ----------------------------------------------------------------------------
def _reference(x, w, b, gamma, beta, *, stride, padding, norm, eps, slope):
    y = jax.lax.conv_general_dilated(
        x, w, (stride, stride), [(padding, padding), (padding, padding)],
        dimension_numbers=("NCHW", "OIHW", "NCHW"))
    y = y + b.reshape(1, -1, 1, 1)
    if norm:
        mean = jnp.mean(y, axis=(0, 2, 3), keepdims=True)
        var = jnp.var(y, axis=(0, 2, 3), keepdims=True)            # biased
        y = (y - mean) * jax.lax.rsqrt(var + eps) * gamma.reshape(1, -1, 1, 1) \
            + beta.reshape(1, -1, 1, 1)
    return jnp.where(y >= 0.0, y, slope * y)


if __name__ == "__main__":
    in_channels, out_channels = 4, 16
    key = jax.random.PRNGKey(0)
    kw_, kb_, kx1, kx2 = jax.random.split(key, 4)
    bound = 1.0 / math.sqrt(in_channels * 9)
    w = jax.random.uniform(kw_, (out_channels, in_channels, 3, 3), jnp.float32, -bound, bound)
    b = jax.random.uniform(kb_, (out_channels,), jnp.float32, -bound, bound)
    gamma = jnp.ones((out_channels,), jnp.float32)
    beta = jnp.zeros((out_channels,), jnp.float32)

    # Case 1: small shapes implied by the module (batch=2, C=4, 16x16).
    x = jax.random.normal(kx1, (2, in_channels, 16, 16), jnp.float32)
    fwd = jax.jit(functools.partial(downsample, stride=2, padding=1, norm=True))
    y = jax.block_until_ready(fwd(x, w, b, gamma, beta))
    y_ref = _reference(x, w, b, gamma, beta, stride=2, padding=1, norm=True,
                       eps=1e-5, slope=0.2)
    assert y.shape == (2, out_channels, 8, 8)
    assert bool(jnp.all(jnp.isfinite(y)))
    assert bool(jnp.allclose(y, y_ref, atol=1e-1, rtol=1e-1))

    # Case 2: odd spatial size + small tile -> multiple pipelined M steps and a
    # zero-padded edge tile (exercises the cross-tile stats accumulator).
    x2 = jax.random.normal(kx2, (2, in_channels, 30, 30), jnp.float32)
    fwd2 = jax.jit(functools.partial(downsample, stride=2, padding=1, norm=True, tm=128))
    y2 = jax.block_until_ready(fwd2(x2, w, b, gamma, beta))
    y2_ref = _reference(x2, w, b, gamma, beta, stride=2, padding=1, norm=True,
                        eps=1e-5, slope=0.2)
    assert y2.shape == (2, out_channels, 15, 15)
    assert bool(jnp.all(jnp.isfinite(y2)))
    assert bool(jnp.allclose(y2, y2_ref, atol=1e-1, rtol=1e-1))

    # Case 3: norm=False path (conv + bias + LeakyReLU fused).
    y3 = jax.block_until_ready(
        jax.jit(functools.partial(downsample, stride=2, padding=1, norm=False))(x, w, b))
    y3_ref = _reference(x, w, b, gamma, beta, stride=2, padding=1, norm=False,
                        eps=1e-5, slope=0.2)
    assert bool(jnp.allclose(y3, y3_ref, atol=1e-1, rtol=1e-1))

    print("KERNEL_OK")
</pallas_src>

<mosaic_0001>
module attributes {stable_mosaic.version = 11 : i64} {
  func.func @_conv_stats_kernel(%arg0: i32, %arg1: memref<16x48xbf16, #tpu.memory_space<vmem>>, %arg2: memref<48x128xbf16, #tpu.memory_space<vmem>>, %arg3: memref<16x128xbf16, #tpu.memory_space<vmem>>, %arg4: memref<16x1xf32, #tpu.memory_space<vmem>>, %arg5: memref<16x1xf32, #tpu.memory_space<vmem>>) attributes {dimension_semantics = [#tpu.dimension_semantics<arbitrary>], iteration_bounds = array<i64: 1>, scalar_prefetch = 0 : i64, scratch_operands = 0 : i64, tpu.core_type = #tpu.core_type<tc>, window_params = [{pipeline_mode = #tpu.pipeline_mode<synchronous>, transform_indices = @transform_0, window_bounds = array<i64: 16, 48>}, {transform_indices = @transform_1, window_bounds = array<i64: 48, 128>}, {transform_indices = @transform_2, window_bounds = array<i64: 16, 128>}, {pipeline_mode = #tpu.pipeline_mode<synchronous>, transform_indices = @transform_3, window_bounds = array<i64: 16, 1>}, {pipeline_mode = #tpu.pipeline_mode<synchronous>, transform_indices = @transform_4, window_bounds = array<i64: 16, 1>}]} {
    %c0_i32 = arith.constant 0 : i32
    %0 = arith.cmpi eq, %arg0, %c0_i32 : i32
    %1 = arith.extui %0 : i1 to i32
    %c0_i32_0 = arith.constant 0 : i32
    %2 = arith.cmpi ne, %1, %c0_i32_0 : i32
    scf.if %2 {
      %cst_16 = arith.constant 0.000000e+00 : f32
      %19 = vector.broadcast %cst_16 : f32 to vector<16x1xf32>
      %c0_17 = arith.constant 0 : index
      %c0_18 = arith.constant 0 : index
      %20 = vector.load %arg4[%c0_17, %c0_18] : memref<16x1xf32, #tpu.memory_space<vmem>>, vector<16x1xf32>
      tpu.vector_store %arg4[%c0_17, %c0_18], %19 {strides = array<i32>} : memref<16x1xf32, #tpu.memory_space<vmem>>, vector<16x1xf32>,
      %cst_19 = arith.constant 0.000000e+00 : f32
      %21 = vector.broadcast %cst_19 : f32 to vector<16x1xf32>
      %c0_20 = arith.constant 0 : index
      %c0_21 = arith.constant 0 : index
      %22 = vector.load %arg5[%c0_20, %c0_21] : memref<16x1xf32, #tpu.memory_space<vmem>>, vector<16x1xf32>
      tpu.vector_store %arg5[%c0_20, %c0_21], %21 {strides = array<i32>} : memref<16x1xf32, #tpu.memory_space<vmem>>, vector<16x1xf32>,
    } else {
    }
    %c0 = arith.constant 0 : index
    %c0_1 = arith.constant 0 : index
    %3 = vector.load %arg1[%c0, %c0_1] : memref<16x48xbf16, #tpu.memory_space<vmem>>, vector<16x48xbf16>
    %c0_2 = arith.constant 0 : index
    %c0_3 = arith.constant 0 : index
    %4 = vector.load %arg2[%c0_2, %c0_3] : memref<48x128xbf16, #tpu.memory_space<vmem>>, vector<48x128xbf16>
    %cst = arith.constant dense<0.000000e+00> : vector<16x128xf32>
    %5 = tpu.matmul %3, %4, %cst {dimension_numbers = #tpu.dot_dimension_numbers<[1], [0], [0], [1], [0, 0, 1, 1], [], []>} : vector<16x48xbf16>, vector<48x128xbf16>, vector<16x128xf32> -> vector<16x128xf32>
    %c0_4 = arith.constant 0 : index
    %c0_5 = arith.constant 0 : index
    %6 = vector.load %arg4[%c0_4, %c0_5] : memref<16x1xf32, #tpu.memory_space<vmem>>, vector<16x1xf32>
    %cst_6 = arith.constant dense<0.000000e+00> : vector<16xf32>
    %7 = vector.multi_reduction <add>, %5, %cst_6 [1] : vector<16x128xf32> to vector<16xf32>
    %8 = vector.shape_cast %7 : vector<16xf32> to vector<16x1xf32>
    %9 = arith.addf %6, %8 : vector<16x1xf32>
    %c0_7 = arith.constant 0 : index
    %c0_8 = arith.constant 0 : index
    %10 = vector.load %arg4[%c0_7, %c0_8] : memref<16x1xf32, #tpu.memory_space<vmem>>, vector<16x1xf32>
    tpu.vector_store %arg4[%c0_7, %c0_8], %9 {strides = array<i32>} : memref<16x1xf32, #tpu.memory_space<vmem>>, vector<16x1xf32>,
    %c0_9 = arith.constant 0 : index
    %c0_10 = arith.constant 0 : index
    %11 = vector.load %arg5[%c0_9, %c0_10] : memref<16x1xf32, #tpu.memory_space<vmem>>, vector<16x1xf32>
    %12 = arith.mulf %5, %5 : vector<16x128xf32>
    %cst_11 = arith.constant dense<0.000000e+00> : vector<16xf32>
    %13 = vector.multi_reduction <add>, %12, %cst_11 [1] : vector<16x128xf32> to vector<16xf32>
    %14 = vector.shape_cast %13 : vector<16xf32> to vector<16x1xf32>
    %15 = arith.addf %11, %14 : vector<16x1xf32>
    %c0_12 = arith.constant 0 : index
    %c0_13 = arith.constant 0 : index
    %16 = vector.load %arg5[%c0_12, %c0_13] : memref<16x1xf32, #tpu.memory_space<vmem>>, vector<16x1xf32>
    tpu.vector_store %arg5[%c0_12, %c0_13], %15 {strides = array<i32>} : memref<16x1xf32, #tpu.memory_space<vmem>>, vector<16x1xf32>,
    %17 = arith.truncf %5 : vector<16x128xf32> to vector<16x128xbf16>
    %c0_14 = arith.constant 0 : index
    %c0_15 = arith.constant 0 : index
    %18 = vector.load %arg3[%c0_14, %c0_15] : memref<16x128xbf16, #tpu.memory_space<vmem>>, vector<16x128xbf16>
    tpu.vector_store %arg3[%c0_14, %c0_15], %17 {strides = array<i32>} : memref<16x128xbf16, #tpu.memory_space<vmem>>, vector<16x128xbf16>,
    return
  }
  func.func @transform_0(%arg0: i32) -> (i32, i32) {
    %c0_i32 = arith.constant 0 : i32
    %c0_i32_0 = arith.constant 0 : i32
    %c0_i32_1 = arith.constant 0 : i32
    return %c0_i32, %c0_i32_0 : i32, i32
  }
  func.func @transform_1(%arg0: i32) -> (i32, i32) {
    %c0_i32 = arith.constant 0 : i32
    %c0_i32_0 = arith.constant 0 : i32
    return %c0_i32, %arg0 : i32, i32
  }
  func.func @transform_2(%arg0: i32) -> (i32, i32) {
    %c0_i32 = arith.constant 0 : i32
    %c0_i32_0 = arith.constant 0 : i32
    return %c0_i32, %arg0 : i32, i32
  }
  func.func @transform_3(%arg0: i32) -> (i32, i32) {
    %c0_i32 = arith.constant 0 : i32
    %c0_i32_0 = arith.constant 0 : i32
    %c0_i32_1 = arith.constant 0 : i32
    return %c0_i32, %c0_i32_0 : i32, i32
  }
  func.func @transform_4(%arg0: i32) -> (i32, i32) {
    %c0_i32 = arith.constant 0 : i32
    %c0_i32_0 = arith.constant 0 : i32
    %c0_i32_1 = arith.constant 0 : i32
    return %c0_i32, %c0_i32_0 : i32, i32
  }
}

module attributes {stable_mosaic.version = 11 : i64} {
  func.func @_bn_lrelu_kernel(%arg0: i32, %arg1: memref<16x128xbf16, #tpu.memory_space<vmem>>, %arg2: memref<16x1xf32, #tpu.memory_space<vmem>>, %arg3: memref<16x1xf32, #tpu.memory_space<vmem>>, %arg4: memref<16x1xf32, #tpu.memory_space<vmem>>, %arg5: memref<16x1xf32, #tpu.memory_space<vmem>>, %arg6: memref<16x128xf32, #tpu.memory_space<vmem>>) attributes {dimension_semantics = [#tpu.dimension_semantics<parallel>], iteration_bounds = array<i64: 1>, scalar_prefetch = 0 : i64, scratch_operands = 0 : i64, tpu.core_type = #tpu.core_type<tc>, window_params = [{transform_indices = @transform_0, window_bounds = array<i64: 16, 128>}, {pipeline_mode = #tpu.pipeline_mode<synchronous>, transform_indices = @transform_1, window_bounds = array<i64: 16, 1>}, {pipeline_mode = #tpu.pipeline_mode<synchronous>, transform_indices = @transform_2, window_bounds = array<i64: 16, 1>}, {pipeline_mode = #tpu.pipeline_mode<synchronous>, transform_indices = @transform_3, window_bounds = array<i64: 16, 1>}, {pipeline_mode = #tpu.pipeline_mode<synchronous>, transform_indices = @transform_4, window_bounds = array<i64: 16, 1>}, {transform_indices = @transform_5, window_bounds = array<i64: 16, 128>}]} {
    %c0 = arith.constant 0 : index
    %c0_0 = arith.constant 0 : index
    %0 = vector.load %arg2[%c0, %c0_0] : memref<16x1xf32, #tpu.memory_space<vmem>>, vector<16x1xf32>
    %cst = arith.constant 7.812500e-03 : f32
    %1 = vector.broadcast %cst : f32 to vector<16x1xf32>
    %2 = arith.mulf %0, %1 : vector<16x1xf32>
    %c0_1 = arith.constant 0 : index
    %c0_2 = arith.constant 0 : index
    %3 = vector.load %arg3[%c0_1, %c0_2] : memref<16x1xf32, #tpu.memory_space<vmem>>, vector<16x1xf32>
    %cst_3 = arith.constant 7.812500e-03 : f32
    %4 = vector.broadcast %cst_3 : f32 to vector<16x1xf32>
    %5 = arith.mulf %3, %4 : vector<16x1xf32>
    %6 = arith.mulf %2, %2 : vector<16x1xf32>
    %7 = arith.subf %5, %6 : vector<16x1xf32>
    %cst_4 = arith.constant 0.000000e+00 : f32
    %8 = vector.broadcast %cst_4 : f32 to vector<16x1xf32>
    %9 = arith.maximumf %7, %8 : vector<16x1xf32>
    %cst_5 = arith.constant 9.99999974E-6 : f32
    %10 = vector.broadcast %cst_5 : f32 to vector<16x1xf32>
    %11 = arith.addf %9, %10 : vector<16x1xf32>
    %12 = math.rsqrt %11 : vector<16x1xf32>
    %c0_6 = arith.constant 0 : index
    %c0_7 = arith.constant 0 : index
    %13 = vector.load %arg4[%c0_6, %c0_7] : memref<16x1xf32, #tpu.memory_space<vmem>>, vector<16x1xf32>
    %14 = arith.mulf %12, %13 : vector<16x1xf32>
    %c0_8 = arith.constant 0 : index
    %c0_9 = arith.constant 0 : index
    %15 = vector.load %arg5[%c0_8, %c0_9] : memref<16x1xf32, #tpu.memory_space<vmem>>, vector<16x1xf32>
    %16 = arith.mulf %2, %14 : vector<16x1xf32>
    %17 = arith.subf %15, %16 : vector<16x1xf32>
    %c0_10 = arith.constant 0 : index
    %c0_11 = arith.constant 0 : index
    %18 = vector.load %arg1[%c0_10, %c0_11] : memref<16x128xbf16, #tpu.memory_space<vmem>>, vector<16x128xbf16>
    %19 = arith.extf %18 : vector<16x128xbf16> to vector<16x128xf32>
    %20 = vector.broadcast %14 : vector<16x1xf32> to vector<16x128xf32>
    %21 = arith.mulf %19, %20 : vector<16x128xf32>
    %22 = vector.broadcast %17 : vector<16x1xf32> to vector<16x128xf32>
    %23 = arith.addf %21, %22 : vector<16x128xf32>
    %cst_12 = arith.constant 0.000000e+00 : f32
    %24 = vector.broadcast %cst_12 : f32 to vector<16x128xf32>
    %25 = arith.cmpf oge, %23, %24 : vector<16x128xf32>
    %cst_13 = arith.constant 2.000000e-01 : f32
    %26 = vector.broadcast %cst_13 : f32 to vector<16x128xf32>
    %27 = arith.mulf %26, %23 : vector<16x128xf32>
    %28 = arith.select %25, %23, %27 : vector<16x128xi1>, vector<16x128xf32>
    %c0_14 = arith.constant 0 : index
    %c0_15 = arith.constant 0 : index
    %29 = vector.load %arg6[%c0_14, %c0_15] : memref<16x128xf32, #tpu.memory_space<vmem>>, vector<16x128xf32>
    tpu.vector_store %arg6[%c0_14, %c0_15], %28 {strides = array<i32>} : memref<16x128xf32, #tpu.memory_space<vmem>>, vector<16x128xf32>,
    return
  }
  func.func @transform_0(%arg0: i32) -> (i32, i32) {
    %c0_i32 = arith.constant 0 : i32
    %c0_i32_0 = arith.constant 0 : i32
    return %c0_i32, %arg0 : i32, i32
  }
  func.func @transform_1(%arg0: i32) -> (i32, i32) {
    %c0_i32 = arith.constant 0 : i32
    %c0_i32_0 = arith.constant 0 : i32
    %c0_i32_1 = arith.constant 0 : i32
    return %c0_i32, %c0_i32_0 : i32, i32
  }
  func.func @transform_2(%arg0: i32) -> (i32, i32) {
    %c0_i32 = arith.constant 0 : i32
    %c0_i32_0 = arith.constant 0 : i32
    %c0_i32_1 = arith.constant 0 : i32
    return %c0_i32, %c0_i32_0 : i32, i32
  }
  func.func @transform_3(%arg0: i32) -> (i32, i32) {
    %c0_i32 = arith.constant 0 : i32
    %c0_i32_0 = arith.constant 0 : i32
    %c0_i32_1 = arith.constant 0 : i32
    return %c0_i32, %c0_i32_0 : i32, i32
  }
  func.func @transform_4(%arg0: i32) -> (i32, i32) {
    %c0_i32 = arith.constant 0 : i32
    %c0_i32_0 = arith.constant 0 : i32
    %c0_i32_1 = arith.constant 0 : i32
    return %c0_i32, %c0_i32_0 : i32, i32
  }
  func.func @transform_5(%arg0: i32) -> (i32, i32) {
    %c0_i32 = arith.constant 0 : i32
    %c0_i32_0 = arith.constant 0 : i32
    return %c0_i32, %arg0 : i32, i32
  }
}

</mosaic_0001>

<bundles_post_ra>
// kernel: downsample.2
= control target key start
LH: loop header
LB: loop body
LE: loop exit
PB: predicated region body
PF: predicated region fallthrough
CT: control target
= control target key end

     0   :  { %vm55_vm0 = vcmask 392192   ;;  %vm19_vm1 = vcmask 7168   ;;  %v139_v4 = vmov 0.0   ;;  %s224_s1 = inlined_call_operand.vmem [shape: bf16[48,128], index: 1, kind: input, shape index: {}]   ;;  %s225_s0 = inlined_call_operand.vmem [shape: bf16[16,48], index: 0, kind: input, shape index: {}]   ;;  %s226_s3 = inlined_call_operand.vmem [shape: f32[16,1], index: 3, kind: output, shape index: {1}]   ;;  %s227_s4 = inlined_call_operand.vmem [shape: f32[16,1], index: 4, kind: output, shape index: {2}]   ;;  %s228_s2 = inlined_call_operand.vmem [shape: bf16[16,128], index: 2, kind: output, shape index: {0}]  }
   0x1   :  { %v132_v0 = vld [vmem:[%s224_s1 + $0x10] sm:$0xff]  ;;  %v131_v1 = vld [vmem:[%s224_s1 + $0x8] sm:$0xff]  ;;  %v130_v2 = vld [vmem:[%s224_s1] sm:$0xff]  ;;  %20 = vst.msk [vmem:[%s226_s3] sm:$0xff] %vm19_vm1, %v139_v4 }
   0x2   :  { %64 = vmatpush.bf16.msra.mxu0 %v132_v0  ;;  %v129_v3 = vld [vmem:[%s225_s0] sm:$0xff]  ;;  %21 = vst.msk [vmem:[%s226_s3 + $0x8] sm:$0xff] %vm19_vm1, %v139_v4 }
   0x3   :  { %22 = vst.msk [vmem:[%s227_s4] sm:$0xff] %vm19_vm1, %v139_v4 }
   0x4   :  { %23 = vst.msk [vmem:[%s227_s4 + $0x8] sm:$0xff] %vm19_vm1, %v139_v4 }
   0x6   :  { %65 = vmatpush.bf16.msra.mxu0 %v131_v1 }
   0x8   :  { %v73_v10 = vld [vmem:[%s226_s3] sm:$0xff] }
   0x9   :  { %v74_v16 = vld [vmem:[%s226_s3 + $0x8] sm:$0xff] }
   0xa   :  { %66 = vmatpush.bf16.msra.mxu0 %v130_v2  ;;  %v84_v12 = vld [vmem:[%s227_s4] sm:$0xff] }
   0xb   :  { %v85_v18 = vld [vmem:[%s227_s4 + $0x8] sm:$0xff] }
   0xd   :  { %128 = vmatmul.msk.bf16.vlgmr.msra.gmra.mxu0 %vm55_vm0, %v129_v3 }
  0x8a   :  { %v68_v5 = vpop.f32.mrf.mxu0 }
  0x8b   :  { %75 = vadd.xlane.f32.xlu0 %v68_v5  ;;  %v86_v6 = vmul.f32 %v68_v5, %v68_v5 }
  0x8d   :  { %88 = vadd.xlane.f32.xlu1 %v86_v6 }
  0x92   :  { %v70_v7 = vpop.f32.mrf.mxu0 }
  0x93   :  { %v136_v8 = vpack.c.bf16 %v70_v7, %v68_v5  ;;  %77 = vadd.xlane.f32.xlu0 %v70_v7  ;;  %v87_v9 = vmul.f32 %v70_v7, %v70_v7 }
  0x95   :  { %137 = vst [vmem:[%s228_s2] sm:$0xff] %v136_v8   ;;  %90 = vadd.xlane.f32.xlu1 %v87_v9 }
  0xfe   :  { %v76_v11 = vpop.xlane.xlu0 %75 }
  0xff   :  { %v79_v13 = vadd.f32 %v76_v11, %v73_v10 }
 0x100   :  { %v89_v14 = vpop.xlane.xlu1 %88 }
 0x101   :  { %82 = vst.msk [vmem:[%s226_s3] sm:$0xff] %vm19_vm1, %v79_v13  ;;  %v92_v15 = vadd.f32 %v89_v14, %v84_v12 }
 0x103   :  { %94 = vst.msk [vmem:[%s227_s4] sm:$0xff] %vm19_vm1, %v92_v15 }
 0x106   :  { %v78_v17 = vpop.xlane.xlu0 %77 }
 0x107   :  { %v80_v19 = vadd.f32 %v78_v17, %v74_v16 }
 0x108   :  { %v91_v20 = vpop.xlane.xlu1 %90 }
 0x109   :  { %83 = vst.msk [vmem:[%s226_s3 + $0x8] sm:$0xff] %vm19_vm1, %v80_v19  ;;  %v93_v21 = vadd.f32 %v91_v20, %v85_v18 }
 0x10b   :  { %95 = vst.msk [vmem:[%s227_s4 + $0x8] sm:$0xff] %vm19_vm1, %v93_v21 }

// kernel: downsample.3
= control target key start
LH: loop header
LB: loop body
LE: loop exit
PB: predicated region body
PF: predicated region fallthrough
CT: control target
= control target key end

     0   :  { %v117_v0 = vmov 0   ;;  %s181_s1 = inlined_call_operand.vmem [shape: f32[16,1], index: 1, kind: input, shape index: {}]   ;;  %s182_s2 = inlined_call_operand.vmem [shape: f32[16,1], index: 2, kind: input, shape index: {}]   ;;  %s183_s3 = inlined_call_operand.vmem [shape: f32[16,1], index: 3, kind: input, shape index: {}]   ;;  %s184_s4 = inlined_call_operand.vmem [shape: f32[16,1], index: 4, kind: input, shape index: {}]   ;;  %s185_s0 = inlined_call_operand.vmem [shape: bf16[16,128], index: 0, kind: input, shape index: {}]   ;;  %s186_s5 = inlined_call_operand.vmem [shape: f32[16,128], index: 5, kind: output, shape index: {}]  }
   0x1   :  { %111 = vset.pattern.permute.xlu0 %v117_v0  ;;  %v20_v1 = vld [vmem:[%s181_s1] sm:$0xff]  ;;  %v21_v2 = vld [vmem:[%s181_s1 + $0x8] sm:$0xff]  ;;  %112 = vset.pattern.permute.xlu1 %v117_v0 }
   0x2   :  { %v24_v3 = vld [vmem:[%s182_s2] sm:$0xff]  ;;  %v22_v4 = vmul.f32 0.0078125, %v20_v1  ;;  %v25_v5 = vld [vmem:[%s182_s2 + $0x8] sm:$0xff]  ;;  %v23_v7 = vmul.f32 0.0078125, %v21_v2 }
   0x3   :  { %v26_v6 = vmul.f32 0.0078125, %v24_v3  ;;  %v27_v8 = vmul.f32 0.0078125, %v25_v5  ;;  %v56_v28 = vld [vmem:[%s183_s3] sm:$0xff]  ;;  %v57_v31 = vld [vmem:[%s183_s3 + $0x8] sm:$0xff] }
   0x4   :  { %v28_v9 = vmul.f32 %v22_v4, %v22_v4  ;;  %v29_v10 = vmul.f32 %v23_v7, %v23_v7  ;;  %v60_v34 = vld [vmem:[%s184_s4] sm:$0xff]  ;;  %v61_v39 = vld [vmem:[%s184_s4 + $0x8] sm:$0xff] }
   0x5   :  { %v107_v41 = vld [vmem:[%s185_s0] sm:$0xff]  }
   0x6   :  { %v30_v11 = vsub.f32 %v26_v6, %v28_v9  ;;  %v31_v12 = vsub.f32 %v27_v8, %v29_v10  ;;  %v108_v42 = vunpack.c.l.bf16 %v107_v41  ;;  %v109_v48 = vunpack.c.h.bf16 %v107_v41 }
   0x8   :  { %v32_v13 = vmax.f32 %v30_v11, 0.0  ;;  %v33_v14 = vmax.f32 %v31_v12, 0.0 }
   0xa   :  { %v34_v15 = vadd.f32 1e-05, %v32_v13  ;;  %v35_v16 = vadd.f32 1e-05, %v33_v14 }
   0xc   :  { %113 = vrsqrt.f32 %v34_v15  ;;  %vm42_vm0 = vweird.f32 %v34_v15  ;;  %vm52_vm2 = vweird.f32 %v35_v16 }
   0xd   :  { %115 = vrsqrt.f32 %v35_v16 }
  0x12   :  { %v114_v17 = vpop.eup %113 }
  0x13   :  { %v116_v18 = vpop.eup %115  ;;  %v37_v19 = vmul.f32 %v114_v17, %v34_v15  ;;  %vm43_vm1 = vweird.f32 %v114_v17 }
  0x14   :  { %v47_v20 = vmul.f32 %v116_v18, %v35_v16  ;;  %vm53_vm3 = vweird.f32 %v116_v18  ;;  %vm44_vm4 = vmor %vm42_vm0, %vm43_vm1 }
  0x15   :  { %v38_v21 = vmul.f32 %v114_v17, %v37_v19  ;;  %vm54_vm5 = vmor %vm52_vm2, %vm53_vm3 }
  0x16   :  { %v48_v22 = vmul.f32 %v116_v18, %v47_v20 }
  0x17   :  { %v39_v23 = vmul.f32 0.5, %v38_v21 }
  0x18   :  { %v49_v24 = vmul.f32 0.5, %v48_v22 }
  0x19   :  { %v40_v25 = vsub.f32 1.5, %v39_v23 }
  0x1a   :  { %v50_v26 = vsub.f32 1.5, %v49_v24 }
  0x1b   :  { %v41_v27 = vmul.f32 %v114_v17, %v40_v25 }
  0x1c   :  { %v51_v29 = vmul.f32 %v116_v18, %v50_v26 }
  0x1d   :  { %v45_v30 = vsel %vm44_vm4, %v114_v17, %v41_v27 }
  0x1e   :  { %v58_v32 = vmul.f32 %v56_v28, %v45_v30  ;;  %v55_v33 = vsel %vm54_vm5, %v116_v18, %v51_v29 }
  0x1f   :  { %v59_v36 = vmul.f32 %v57_v31, %v55_v33 }
  0x20   :  { %72 = vperm.xlu0 %111, %v58_v32   ;;  %v62_v35 = vmul.f32 %v58_v32, %v22_v4 }
  0x21   :  { %v63_v38 = vmul.f32 %v59_v36, %v23_v7 }
  0x22   :  { %v64_v37 = vsub.f32 %v60_v34, %v62_v35 }
  0x23   :  { %v65_v40 = vsub.f32 %v61_v39, %v63_v38 }
  0x24   :  { %84 = vperm.xlu1 %112, %v64_v37  }
  0x28   :  { %77 = vperm.xlu0 %111, %v59_v36  }
  0x2c   :  { %89 = vperm.xlu1 %112, %v65_v40  }
  0x92   :  { %v73_v43 = vpop.permute.xlu0 %72 }
  0x93   :  { %v80_v44 = vmul.f32 %v108_v42, %v73_v43 }
  0x96   :  { %v85_v45 = vpop.permute.xlu1 %84 }
  0x97   :  { %v92_v46 = vadd.f32 %v85_v45, %v80_v44 }
  0x99   :  { %vm94_vm6 = vcmp.ge.f32.partialorder %v92_v46, 0.0  ;;  %v96_v47 = vmul.f32 0.2, %v92_v46 }
  0x9a   :  { %v78_v49 = vpop.permute.xlu0 %77 }
  0x9b   :  { %v98_v50 = vsel %vm94_vm6, %v92_v46, %v96_v47  ;;  %v81_v51 = vmul.f32 %v109_v48, %v78_v49 }
  0x9c   :  { %100 = vst [vmem:[%s186_s5] sm:$0xff] %v98_v50 }
  0x9e   :  { %v90_v52 = vpop.permute.xlu1 %89 }
  0x9f   :  { %v93_v53 = vadd.f32 %v90_v52, %v81_v51 }
  0xa1   :  { %vm95_vm7 = vcmp.ge.f32.partialorder %v93_v53, 0.0  ;;  %v97_v54 = vmul.f32 0.2, %v93_v53 }
  0xa3   :  { %v99_v55 = vsel %vm95_vm7, %v93_v53, %v97_v54 }
  0xa4   :  { %101 = vst [vmem:[%s186_s5 + $0x8] sm:$0xff] %v99_v55 }

</bundles_post_ra>
